<compile_context>
chip_gen: v5e
topology: v5e:2x2
jax: 0.10.0
libtpu: 0.0.40
codegen_flags: <defaults>
</compile_context>

<pallas_src>
import math
import functools

import jax
import jax.numpy as jnp
from jax.experimental import pallas as pl
from jax.experimental.pallas import tpu as pltpu


def _eca_kernel(w_ref, x_ref, o_ref, *, inv_hw, k, pad, c, spatial_axis):
    # w_ref: (k,) f32 in SMEM.
    # x_ref/o_ref: (TB, C, HW) or (TB, HW, C) blocks in VMEM, native dtype.
    x = x_ref[...]
    xf = x.astype(jnp.float32)                             # vreg-only upcast

    # Global average pool over the spatial axis -> (TB, C), f32 accumulation.
    y = jnp.sum(xf, axis=spatial_axis) * inv_hw

    # k-tap channel conv, PyTorch Conv1d semantics (cross-correlation with
    # zero padding):  z[b, i] = sum_t w[t] * y[b, i + t - pad]
    ch = jax.lax.broadcasted_iota(jnp.int32, y.shape, 1)   # channel index i
    z = jnp.zeros_like(y)
    for t in range(k):
        s = t - pad
        if s == 0:
            contrib = y
        else:
            # rolled[b, i] = y[b, (i + s) % C]; pltpu.roll requires a
            # non-negative shift, so use (-s) % C.  Mask the wrap-around to
            # emulate zero padding: valid iff 0 <= i + s < C.
            rolled = pltpu.roll(y, (-s) % c, 1)
            valid = (ch + s >= 0) & (ch + s < c)
            contrib = jnp.where(valid, rolled, 0.0)
        z = z + w_ref[t] * contrib

    scale = jax.nn.sigmoid(z)                              # (TB, C), EUP

    # Broadcast the channel gate back over the spatial axis; store native dtype.
    gate = scale[:, :, None] if spatial_axis == 2 else scale[:, None, :]
    o_ref[...] = (xf * gate).astype(o_ref.dtype)


def eca_block(x, conv_w):
    """x: (B, C, H, W); conv_w: (k,) Conv1d weight (in=out=1, no bias)."""
    b, c, h, w = x.shape
    k = int(conv_w.shape[0])
    pad = (k - 1) // 2
    hw = h * w

    # Layout choice: keep spatial on lanes when HW is lane-dense; for tiny
    # spatial maps with large C (real ECA shapes, e.g. 7x7 x 512ch) put the
    # channels on the lane axis so output stores stay lane-dense.
    channels_on_lanes = (hw < 128) and (c >= 128)

    xf = x.reshape(b, c, hw)
    if channels_on_lanes:
        xf = jnp.transpose(xf, (0, 2, 1))                  # (B, HW, C)
        block_tail = (hw, c)
        spatial_axis = 1
    else:
        block_tail = (c, hw)
        spatial_axis = 2

    # Batch tile: blocks of at most ~2 MiB of input (in+out double-buffered
    # stays well under any generation's scoped-VMEM default, incl. v7x's
    # per-TC budget) and at least min(B, 4) grid steps for pipelining and
    # v7x megacore sharding of the parallel batch axis.
    itemsize = jnp.dtype(x.dtype).itemsize
    bytes_per_batch = c * hw * itemsize
    tb_cap = max(1, (2 * 1024 * 1024) // max(1, bytes_per_batch))
    min_steps = min(b, 4)
    tb = max(1, min(b, tb_cap, b // min_steps))
    grid = (pl.cdiv(b, tb),)

    kern = functools.partial(
        _eca_kernel, inv_hw=1.0 / float(hw), k=k, pad=pad, c=c,
        spatial_axis=spatial_axis)

    cost = pl.CostEstimate(
        flops=2 * b * c * hw + 2 * b * c * k,
        transcendentals=b * c,
        bytes_accessed=2 * b * c * hw * itemsize + k * 4,
    )

    out = pl.pallas_call(
        kern,
        out_shape=jax.ShapeDtypeStruct(xf.shape, x.dtype),
        grid=grid,
        in_specs=[
            pl.BlockSpec(memory_space=pltpu.MemorySpace.SMEM),   # conv_w (k,)
            pl.BlockSpec((tb,) + block_tail, lambda i: (i, 0, 0)),
        ],
        out_specs=pl.BlockSpec((tb,) + block_tail, lambda i: (i, 0, 0)),
        compiler_params=pltpu.CompilerParams(
            dimension_semantics=("parallel",)),
        cost_estimate=cost,
    )(conv_w.astype(jnp.float32), xf)

    if channels_on_lanes:
        out = jnp.transpose(out, (0, 2, 1))
    return out.reshape(b, c, h, w)


def _eca_reference(x, conv_w):
    """Pure-JAX reference matching the PyTorch forward semantics."""
    b, c, h, w = x.shape
    k = conv_w.shape[0]
    pad = (k - 1) // 2
    y = jnp.mean(x.astype(jnp.float32), axis=(2, 3))       # (B, C)
    yp = jnp.pad(y, ((0, 0), (pad, pad)))
    z = sum(conv_w[t] * yp[:, t:t + c] for t in range(k))
    s = jax.nn.sigmoid(z)                                  # (B, C)
    return (x.astype(jnp.float32) * s[:, :, None, None]).astype(x.dtype)


if __name__ == "__main__":
    # Module config: channel=16 -> k_size = int(abs((log2(16)+1)/2)) = 2 -> even -> 3
    channel = 16
    k_size = int(abs((math.log(channel, 2) + 1) / 2))
    k_size = k_size if k_size % 2 else k_size + 1

    key = jax.random.PRNGKey(0)
    kx, kw = jax.random.split(key)

    B, C, H, W = 2, channel, 16, 16
    x = jax.random.normal(kx, (B, C, H, W), dtype=jnp.float32)

    # Deterministic Conv1d weight init (kaiming-uniform style bound = 1/sqrt(fan_in)).
    bound = 1.0 / math.sqrt(1 * k_size)
    conv_w = jax.random.uniform(
        kw, (k_size,), dtype=jnp.float32, minval=-bound, maxval=bound)

    out = eca_block(x, conv_w)
    out = jax.block_until_ready(out)

    ref = _eca_reference(x, conv_w)
    assert out.shape == (B, C, H, W)
    assert out.dtype == x.dtype
    assert jnp.allclose(out, ref, atol=1e-5, rtol=1e-5), "mismatch vs reference"

    print("KERNEL_OK")
</pallas_src>

<mosaic_0001>
module attributes {stable_mosaic.version = 11 : i64} {
  func.func @_eca_kernel(%arg0: i32, %arg1: memref<3xf32, #tpu.memory_space<smem>>, %arg2: memref<1x16x256xf32, #tpu.memory_space<vmem>>, %arg3: memref<1x16x256xf32, #tpu.memory_space<vmem>>) attributes {dimension_semantics = [#tpu.dimension_semantics<parallel>], iteration_bounds = array<i64: 2>, scalar_prefetch = 0 : i64, scratch_operands = 0 : i64, tpu.core_type = #tpu.core_type<tc>, window_params = [{transform_indices = @transform_0, window_bounds = array<i64: 3>}, {transform_indices = @transform_1, window_bounds = array<i64: 1, 16, 256>}, {transform_indices = @transform_2, window_bounds = array<i64: 1, 16, 256>}]} {
    %c0 = arith.constant 0 : index
    %c0_0 = arith.constant 0 : index
    %c0_1 = arith.constant 0 : index
    %0 = vector.load %arg2[%c0, %c0_0, %c0_1] : memref<1x16x256xf32, #tpu.memory_space<vmem>>, vector<1x16x256xf32>
    %cst = arith.constant dense<0.000000e+00> : vector<1x16xf32>
    %1 = vector.multi_reduction <add>, %0, %cst [2] : vector<1x16x256xf32> to vector<1x16xf32>
    %cst_2 = arith.constant 3.906250e-03 : f32
    %2 = vector.broadcast %cst_2 : f32 to vector<1x16xf32>
    %3 = arith.mulf %1, %2 : vector<1x16xf32>
    %4 = tpu.iota {dimensions = array<i32: 1>} : vector<1x16xi32>
    %cst_3 = arith.constant 0.000000e+00 : f32
    %5 = vector.broadcast %cst_3 : f32 to vector<1x16xf32>
    %c1_i32 = arith.constant 1 : i32
    %6 = tpu.dynamic_rotate %3 by %c1_i32 dim 1 : vector<1x16xf32>, i32 -> vector<1x16xf32>
    %c-1_i32 = arith.constant -1 : i32
    %7 = vector.broadcast %c-1_i32 : i32 to vector<1x16xi32>
    %8 = arith.addi %4, %7 : vector<1x16xi32>
    %c0_i32 = arith.constant 0 : i32
    %9 = vector.broadcast %c0_i32 : i32 to vector<1x16xi32>
    %10 = arith.cmpi sge, %8, %9 : vector<1x16xi32>
    %c-1_i32_4 = arith.constant -1 : i32
    %11 = vector.broadcast %c-1_i32_4 : i32 to vector<1x16xi32>
    %12 = arith.addi %4, %11 : vector<1x16xi32>
    %c16_i32 = arith.constant 16 : i32
    %13 = vector.broadcast %c16_i32 : i32 to vector<1x16xi32>
    %14 = arith.cmpi slt, %12, %13 : vector<1x16xi32>
    %15 = arith.andi %10, %14 : vector<1x16xi1>
    %cst_5 = arith.constant 0.000000e+00 : f32
    %16 = vector.broadcast %cst_5 : f32 to vector<1x16xf32>
    %17 = arith.select %15, %6, %16 : vector<1x16xi1>, vector<1x16xf32>
    %c0_6 = arith.constant 0 : index
    %18 = memref.load %arg1[%c0_6] : memref<3xf32, #tpu.memory_space<smem>>
    %19 = vector.broadcast %18 : f32 to vector<1x16xf32>
    %20 = arith.mulf %19, %17 : vector<1x16xf32>
    %21 = arith.addf %5, %20 : vector<1x16xf32>
    %c1 = arith.constant 1 : index
    %22 = memref.load %arg1[%c1] : memref<3xf32, #tpu.memory_space<smem>>
    %23 = vector.broadcast %22 : f32 to vector<1x16xf32>
    %24 = arith.mulf %23, %3 : vector<1x16xf32>
    %25 = arith.addf %21, %24 : vector<1x16xf32>
    %c15_i32 = arith.constant 15 : i32
    %26 = tpu.dynamic_rotate %3 by %c15_i32 dim 1 : vector<1x16xf32>, i32 -> vector<1x16xf32>
    %c1_i32_7 = arith.constant 1 : i32
    %27 = vector.broadcast %c1_i32_7 : i32 to vector<1x16xi32>
    %28 = arith.addi %4, %27 : vector<1x16xi32>
    %c0_i32_8 = arith.constant 0 : i32
    %29 = vector.broadcast %c0_i32_8 : i32 to vector<1x16xi32>
    %30 = arith.cmpi sge, %28, %29 : vector<1x16xi32>
    %c1_i32_9 = arith.constant 1 : i32
    %31 = vector.broadcast %c1_i32_9 : i32 to vector<1x16xi32>
    %32 = arith.addi %4, %31 : vector<1x16xi32>
    %c16_i32_10 = arith.constant 16 : i32
    %33 = vector.broadcast %c16_i32_10 : i32 to vector<1x16xi32>
    %34 = arith.cmpi slt, %32, %33 : vector<1x16xi32>
    %35 = arith.andi %30, %34 : vector<1x16xi1>
    %cst_11 = arith.constant 0.000000e+00 : f32
    %36 = vector.broadcast %cst_11 : f32 to vector<1x16xf32>
    %37 = arith.select %35, %26, %36 : vector<1x16xi1>, vector<1x16xf32>
    %c2 = arith.constant 2 : index
    %38 = memref.load %arg1[%c2] : memref<3xf32, #tpu.memory_space<smem>>
    %39 = vector.broadcast %38 : f32 to vector<1x16xf32>
    %40 = arith.mulf %39, %37 : vector<1x16xf32>
    %41 = arith.addf %25, %40 : vector<1x16xf32>
    %42 = arith.negf %41 : vector<1x16xf32>
    %43 = math.exp %42 : vector<1x16xf32>
    %cst_12 = arith.constant 1.000000e+00 : f32
    %44 = vector.broadcast %cst_12 : f32 to vector<1x16xf32>
    %45 = arith.addf %44, %43 : vector<1x16xf32>
    %46 = arith.divf %44, %45 : vector<1x16xf32>
    %47 = vector.shape_cast %46 : vector<1x16xf32> to vector<1x16x1xf32>
    %48 = vector.broadcast %47 : vector<1x16x1xf32> to vector<1x16x256xf32>
    %49 = arith.mulf %0, %48 : vector<1x16x256xf32>
    %c0_13 = arith.constant 0 : index
    %c0_14 = arith.constant 0 : index
    %c0_15 = arith.constant 0 : index
    %50 = vector.load %arg3[%c0_13, %c0_14, %c0_15] : memref<1x16x256xf32, #tpu.memory_space<vmem>>, vector<1x16x256xf32>
    tpu.vector_store %arg3[%c0_13, %c0_14, %c0_15], %49 {strides = array<i32>} : memref<1x16x256xf32, #tpu.memory_space<vmem>>, vector<1x16x256xf32>,
    return
  }
  func.func @transform_0(%arg0: i32) -> i32 {
    %c0_i32 = arith.constant 0 : i32
    %c0_i32_0 = arith.constant 0 : i32
    return %c0_i32 : i32
  }
  func.func @transform_1(%arg0: i32) -> (i32, i32, i32) {
    %c0_i32 = arith.constant 0 : i32
    %c0_i32_0 = arith.constant 0 : i32
    %c0_i32_1 = arith.constant 0 : i32
    return %arg0, %c0_i32, %c0_i32_0 : i32, i32, i32
  }
  func.func @transform_2(%arg0: i32) -> (i32, i32, i32) {
    %c0_i32 = arith.constant 0 : i32
    %c0_i32_0 = arith.constant 0 : i32
    %c0_i32_1 = arith.constant 0 : i32
    return %arg0, %c0_i32, %c0_i32_0 : i32, i32, i32
  }
}

</mosaic_0001>

<bundles_post_ra>
// kernel: tpu_custom_call.1
= control target key start
LH: loop header
LB: loop body
LE: loop exit
PB: predicated region body
PF: predicated region fallthrough
CT: control target
= control target key end

     0   :  { %7 = vsyncpa [#allocation5], 0  ;;  %s779_s0 = inlined_call_operand.hbm [shape: f32[3], index: 0, kind: input, shape index: {}]   ;;  %s780_s1 = inlined_call_operand.hbm [shape: f32[2,16,256], index: 1, kind: input, shape index: {}]   ;;  %s781_s2 = inlined_call_operand.hbm [shape: f32[2,16,256], index: 2, kind: output, shape index: {}]  }
   0x1   :  { %8 = vsyncpa [#allocation3], 0 }
   0x2   :  { %10 = vsyncpa [#allocation3 + $0x1], 0 }
   0x3   :  { %11 = vsyncpa [#allocation4], 0 }
   0x4   :  { %13 = vsyncpa [#allocation4 + $0x1], 0  ;;  %s614_s9 = smov 0   ;;  %s616_s10 = smov 0  }
   0x5   :  { %s618_s11 = smov 0   ;;  %s620_s12 = smov 0  }
   0x6 LB: > { %s635_s13 = sadd.s32 4294967295, %s590_s12   ;;  %s384_s14 = sadd.s32 4294967294, %s590_s12   ;;  %s590_s12 = sphi %s620_s12, %s792_s12   ;;  %s586_s11 = sphi %s618_s11, %s791_s11   ;;  %s582_s10 = sphi %s616_s10, %s790_s10   ;;  %s578_s9 = sphi %s614_s9, %s789_s9  }
   0x7   : > { %s639_s15 = sadd.s32 1, %s590_s12   ;;  %s47_s16 = sadd.s32 1, %s586_s11 }
   0x8   : > { %s44_s17 = ssub.s32 %s590_s12, %s639_s15  ;;  %p54_p0 = scmp.ne.s32.totalorder %s586_s11, %s582_s10 }
   0x9   : > { %p45_p1 = scmp.eq.s32.totalorder %s44_s17, 0  ;;  %p55_p2 = scmp.eq.s32.totalorder %s590_s12, 0 }
   0xa   : > { %p60_p3 = scmp.ne.s32.totalorder %s582_s10, %s578_s9  ;;  %p61_p4 = scmp.eq.s32.totalorder %s635_s13, 0 }
   0xb   : > { %s651_s18 = scalar_select %p45_p1, %s586_s11, %s47_s16  }
   0xc   : > { %p653_p5 = por %p55_p2, %p54_p0  ;;  %p659_p6 = por %p61_p4, %p60_p3 }
   0xd   : > { %p84_p7 = scmp.eq.s32.totalorder %s635_s13, 1  ;;  %p90_p8 = scmp.eq.s32.totalorder %s384_s14, 1 }
   0xe   : > { %p385_p9 = scmp.ge.s32.totalorder %s590_s12, 1  ;;  %p97_p10 = scmp.lt.s32.totalorder %s590_s12, 3 }
   0xf   : > { %p666_p11 = por %p84_p7, %p54_p0  ;;  %p670_p12 = por %p90_p8, %p60_p3 }
  0x10   : > { %p674_p13 = pnand %p385_p9, %p97_p10  ;;  %s109_s26 = sshll.u32 %s779_s0, 4  ;;  %s110_s26 = int_to_ptr.hbm [resolvable:$true] %s109_s26 }
  0x11   : > { %p426_p2 = scmp.lt.s32.totalorder %s590_s12, 2  ;;  %s120_s27 = sand.u32 1, %s586_s11  }
  0x12   : > { %p413_p1 = pneg %p674_p13  ;;  %s388_s29 = sshll.u32 %s120_s27, 5 }
  0x13   : > { %p690_p3 = pnand %p426_p2, %p653_p5  ;;  %s592_s30 = smov [#allocation2]  }
  0x14   : > { %p414_p7 = pnand %p413_p1, %p61_p4  ;;  %s403_s3 = sshll.u32 %s590_s12, 5 }
  0x15   : > { %s124_s4 = scalar_lea.vmem [#allocation6], %s388_s29  ;;  %s129_s8 = scalar_lea.hbm %s780_s1, %s403_s3 }
  0x16   : > { %416 = dma.hbm_to_smem (!%p414_p7), %s110_s26, 16, %s592_s30, [#allocation5]  }
  0x17   : > { %s132_s5 = sshll.u32 %s124_s4, 4  ;;  %s130_s14 = sshll.u32 %s129_s8, 4  ;;  %s133_s5 = int_to_ptr.vmem [resolvable:$true] %s132_s5  ;;  %s131_s14 = int_to_ptr.hbm [resolvable:$true] %s130_s14 }
  0x18   : > { %s121_s16 = scalar_lea.sflag [#allocation3], %s120_s27  ;;  %s490_s17 = sshra.s32 %s131_s14, 4  ;;  %s491_s17 = int_to_ptr.hbm [resolvable:$true] %s490_s17 }
  0x19   : > { %s492_s19 = scalar_lea.hbm %s491_s17, 32  ;;  %p494_p8 = pneg %p690_p3 }
  0x1a   : > { %p493_p5 = scmp.ne.s32.totalorder %s491_s17, %s492_s19  ;;  %s497_s26 = scalar_lea.hbm %s780_s1, 64 }
  0x1b   : > { %p498_p1 = scmp.lt.s32.totalorder %s491_s17, %s780_s1  ;;  %p499_p2 = scmp.lt.s32.totalorder %s497_s26, %s492_s19 }
  0x1c   : > { %p495_p9 = pnand %p494_p8, %p493_p5 }
  0x1d   : > { %p500_p7 = por %p499_p2, %p498_p1 }
  0x1e   : > { %p496_p10 = pneg %p495_p9 }
  0x20   : > { %p501_p0 = pnand %p500_p7, %p496_p10 }
  0x22   : > { %504 = shalt.err (!%p501_p0)
}
  0x23   : > { %s593_s27 = smov 256   ;;  %s594_s3 = smov 16  }
  0x24   : > { %420 = dma.hbm_to_vmem [thread:$0]  (!%p690_p3), %s131_s14, 512, %s133_s5, %s121_s16, %s593_s27, %s593_s27, %s594_s3  }
  0x25   : > { %144 = sbr.rel (%p674_p13) target bundleno = 671 (0x29f), region = 28 }
  0x2a   : > { %565 = dma.done.wait (%p61_p4), [#allocation5], 16  }
  0x2b   : > { %567 = vsyncadd (%p61_p4), [#allocation5], 4294967280  ;;  %s715_s4 = sand.u32 1, %s582_s10  }
  0x2c   : > { %s393_s6 = sshll.u32 %s715_s4, 5  ;;  %s152_s7 = scalar_lea.sflag [#allocation3], %s715_s4 }
  0x2d   : > { %s155_s28 = scalar_lea.vmem [#allocation6], %s393_s6 }
  0x2e   : > { %569 = dma.done.wait (%p659_p6), %s152_s7, 512  }
  0x2f   : > { %571 = vsyncadd (%p659_p6), %s152_s7, 4294966784 }
  0x30   : > { %161 = sfence }
  0x31   : > { %v725_v0 = vld [vmem:[%s155_s28] sm:$0xff]  ;;  %v727_v1 = vld [vmem:[%s155_s28 + $0x8] sm:$0xff]  ;;  %v731_v3 = vld [vmem:[%s155_s28 + $0x10] sm:$0xff]  ;;  %s395_s23 = sld [smem:[#allocation2 + $0x1]]  ;;  %v190_v7 = vlaneseq  ;;  %vm197_vm0 = vcmask 130112   ;;  %s595_s20 = smov 16  }
  0x32   : > { %v182_v2 = vadd.f32 %v727_v1, %v725_v0  ;;  %v733_v4 = vld [vmem:[%s155_s28 + $0x18] sm:$0xff]  ;;  %vm200_vm1 = vcmask 1047680   ;;  %s596_s5 = smov 113   ;;  %s597_s8 = smov 127  }
  0x33   : > { %v185_v5 = vadd.f32 %v733_v4, %v731_v3  ;;  %v191_v8 = vand.u32 127, %v190_v7  ;;  %v264_v27 = vshrl.u32 %v190_v7, 7  ;;  %s216_s14 = sld [smem:[#allocation2]]  ;;  %s404_s17 = sshll.u32 %s635_s13, 5 }
  0x34   : > { %183 = vadd.xlane.f32.xlu0 %v182_v2  ;;  %s396_s16 = sld [smem:[#allocation2 + $0x2]]  ;;  %s295_s25 = scalar_lea.hbm %s781_s2, %s404_s17 }
  0x35   : > { %v195_v11 = vadd.s32 4294967288, %v191_v8  ;;  %v207_v26 = vadd.s32 4294967295, %v191_v8  ;;  %468 = vset.pattern.permute.xlu0 %v264_v27  ;;  %v271_v28 = vadd.s32 8, %v264_v27  ;;  %v231_v30 = vadd.s32 1, %v191_v8  ;;  %s177_s26 = scalar_lea.vmem [#allocation7], %s393_s6  ;;  %s298_s30 = sshll.u32 %s295_s25, 4  ;;  %s299_s30 = int_to_ptr.hbm [resolvable:$true] %s298_s30 }
  0x36   : > { %s296_s29 = sshll.u32 %s177_s26, 4  ;;  %s284_s13 = scalar_lea.sflag [#allocation4], %s715_s4  ;;  %s297_s29 = int_to_ptr.vmem [resolvable:$true] %s296_s29 }
  0x37   : > { %v221_v10 = vstv %s395_s23  ;;  %vm208_vm2 = vcmp.ge.s32.totalorder %v207_v26, 0  ;;  %vm209_vm3 = vcmp.lt.s32.totalorder %v207_v26, 16  ;;  %469 = vset.pattern.permute.xlu1 %v271_v28  ;;  %vm233_vm5 = vcmp.lt.s32.totalorder %v231_v30, 16  ;;  %s534_s27 = sshra.s32 %s299_s30, 4  ;;  %s540_s28 = scalar_lea.hbm %s781_s2, 64  ;;  %s535_s27 = int_to_ptr.hbm [resolvable:$true] %s534_s27 }
  0x38   : > { %vm210_vm4 = vmand %vm208_vm2, %vm209_vm3  ;;  %s536_s3 = scalar_lea.hbm %s535_s27, 32  ;;  %p541_p0 = scmp.lt.s32.totalorder %s535_s27, %s781_s2 }
  0x39   : > { %v217_v31 = vstv %s216_s14  ;;  %p537_p4 = scmp.ne.s32.totalorder %s535_s27, %s536_s3  ;;  %p542_p3 = scmp.lt.s32.totalorder %s540_s28, %s536_s3 }
  0x3a   : > { %v240_v34 = vstv %s396_s16 }
  0x3b   : > { %p538_p6 = pnand %p537_p4, %p666_p11  ;;  %p543_p5 = por %p542_p3, %p541_p0 }
  0x3c   : > { %186 = vadd.xlane.f32.xlu0 %v185_v5 }
  0x3d   : > { %p539_p13 = pneg %p538_p6 }
  0x3f   : > { %p544_p8 = pnand %p543_p5, %p539_p13 }
  0xa7   : > { %v184_v6 = vpop.xlane.xlu0 %183 }
  0xa8   : > { %v188_v9 = vmul.f32 0.00390625, %v184_v6 }
  0xaa   : > { %v222_v13 = vmul.f32 %v221_v10, %v188_v9  ;;  %v194_v15 = vperm.slane %v188_v9, %v191_v8 }
  0xac   : > { %v226_v18 = vperm.slane %v222_v13, %v191_v8 }
  0xaf   : > { %v187_v12 = vpop.xlane.xlu0 %186 }
  0xb0   : > { %v189_v14 = vmul.f32 0.00390625, %v187_v12 }
  0xb2   : > { %v196_v16 = vperm.slane %v189_v14, %v195_v11  ;;  %v223_v17 = vmul.f32 %v221_v10, %v189_v14 }
  0xb4   : > { %v227_v19 = vperm.slane %v223_v17, %v195_v11  ;;  %v198_v20 = vsel %vm197_vm0, %v196_v16, %v194_v15 }
  0xb5   : > { %201 = vrot.lane.b32.xlu1 %v198_v20, %s595_s20 }
  0xb6   : > { %v228_v21 = vsel %vm197_vm0, %v227_v19, %v226_v18 }
 0x127   : > { %v202_v22 = vpop.permute.xlu1 %201 }
 0x128   : > { %v203_v23 = vsel %vm200_vm1, %v202_v22, %v198_v20 }
 0x129   : > { %204 = vrot.lane.b32.xlu1 %v203_v23, %s595_s20 }
 0x19b   : > { %v205_v24 = vpop.permute.xlu1 %204 }
 0x19c   : > { %v206_v25 = vsel %vm200_vm1, %v205_v24, %v198_v20 }
 0x19d   : > { %212 = vrot.lane.b32.xlu2 %v206_v25, %s596_s5 }
 0x1a5   : > { %235 = vrot.lane.b32.xlu2 %v206_v25, %s597_s8 }
 0x1f7   : > { %v213_v29 = vpop.permute.xlu2 %212 }
 0x1f8   : > { %v215_v32 = vsel %vm210_vm4, %v213_v29, 0.0 }
 0x1f9   : > { %v218_v33 = vmul.f32 %v217_v31, %v215_v32 }
 0x1fb   : > { %v230_v37 = vadd.f32 %v228_v21, %v218_v33 }
 0x1ff   : > { %v236_v35 = vpop.permute.xlu2 %235 }
 0x200   : > { %v238_v36 = vsel %vm233_vm5, %v236_v35, 0.0 }
 0x201   : > { %v241_v38 = vmul.f32 %v240_v34, %v238_v36 }
 0x203   : > { %v242_v39 = vadd.f32 %v241_v38, %v230_v37 }
 0x205   : > { %v397_v40 = vmul.f32 -1.442695, %v242_v39 }
 0x207   : > { %471 = vpow2.f32 %v397_v40 }
 0x20d   : > { %v472_v41 = vpop.eup %471 }
 0x20e   : > { %v246_v42 = vadd.f32 1.0, %v472_v41 }
 0x210   : > { %473 = vrcp.f32 %v246_v42  ;;  %v258_v46 = vand.u32 2147483648, %v246_v42  ;;  %v256_v48 = vand.u32 2147483647, %v246_v42  ;;  %vm252_vm7 = vweird.f32 %v246_v42 }
 0x212   : > { %v259_v50 = vor.u32 1.1754944e-38, %v258_v46  ;;  %vm257_vm9 = vcmp.eq.f32.partialorder %v256_v48, 8.507059e+37 }
 0x216   : > { %v474_v43 = vpop.eup %473 }
 0x217   : > { %v248_v44 = vmul.f32 %v474_v43, %v246_v42  ;;  %vm253_vm6 = vweird.f32 %v474_v43 }
 0x218   : > { %vm254_vm8 = vmor %vm252_vm7, %vm253_vm6 }
 0x219   : > { %v249_v45 = vsub.f32 1.0, %v248_v44 }
 0x21b   : > { %v250_v47 = vmul.f32 %v474_v43, %v249_v45 }
 0x21d   : > { %v251_v49 = vadd.f32 %v474_v43, %v250_v47 }
 0x21f   : > { %v255_v51 = vsel %vm254_vm8, %v474_v43, %v251_v49 }
 0x220   : > { %v260_v52 = vsel %vm257_vm9, %v259_v50, %v255_v51 }
 0x221   : > { %v262_v53 = vperm.slane %v260_v52, 0 }
 0x223   : > { %273 = vperm.xlu1 %469, %v262_v53   ;;  %267 = vperm.xlu0 %468, %v262_v53  }
 0x22b   : > { %470 = vset.pattern.permute.xlu0 %v271_v28 }
 0x295   : > { %v274_v54 = vpop.permute.xlu1 %273  ;;  %v268_v55 = vpop.permute.xlu0 %267 }
 0x296   : > { %v277_v56 = vmul.f32 %v274_v54, %v731_v3  ;;  %v278_v57 = vmul.f32 %v274_v54, %v733_v4  ;;  %v275_v58 = vmul.f32 %v268_v55, %v725_v0  ;;  %v276_v59 = vmul.f32 %v268_v55, %v727_v1 }
 0x298   : > { %281 = vst [vmem:[%s177_s26 + $0x10] sm:$0xff] %v277_v56 }
 0x299   : > { %282 = vst [vmem:[%s177_s26 + $0x18] sm:$0xff] %v278_v57 }
 0x29a   : > { %279 = vst [vmem:[%s177_s26] sm:$0xff] %v275_v58 }
 0x29b   : > { %280 = vst [vmem:[%s177_s26 + $0x8] sm:$0xff] %v276_v59 }
 0x29c   : > { %547 = shalt.err (!%p544_p8)
}
 0x29d   : > { %s598_s4 = smov 256  }
 0x29e   : > { %411 = dma.vmem_to_hbm [thread:$0]  (%p666_p11), %s297_s29, 512, %s299_s30, %s284_s13, %s598_s4, %s598_s4, %s595_s20  }
 0x29f PF: > { %s313_s8 = sand.u32 1, %s578_s9   ;;  %p788_p9 = scmp.ge.s32.totalorder %s590_s12, 2 }
 0x2a0   : > { %s314_s14 = scalar_lea.sflag [#allocation4], %s313_s8 }
 0x2a1   : > { %p422_p10 = pnand %p788_p9, %p670_p12 }
 0x2a3   : > { %p423_p1 = pneg %p422_p10 }
 0x2a5   : > { %573 = dma.done.wait (%p423_p1), %s314_s14, 512  }
 0x2a6   : > { %575 = vsyncadd (%p423_p1), %s314_s14, 4294966784  ;;  %p16_p2 = scmp.ge.s32.totalorder %s639_s15, 4   ;;  %s789_s9 = smov %s582_s10 }
 0x2a7   : > { %s790_s10 = smov %s586_s11  ;;  %s791_s11 = smov %s651_s18 }
 0x2a8   : > { %s792_s12 = smov %s639_s15  ;;  %18 = sbr.rel (!%p16_p2) target bundleno = 6 (0x6), region = 78 }
 0x2ad   :  { %320 = vsyncpa [#allocation3], 1 }
 0x2ae   :  { %322 = vsyncpa [#allocation3 + $0x1], 1 }
 0x2af   :  { %323 = vsyncpa [#allocation4], 1 }
 0x2b0   :  { %325 = vsyncpa [#allocation4 + $0x1], 1 }
 0x2b1   :  { %326 = vsyncpa [#allocation5], 1 }
 0x2b2   :  { %328 = vsyncpa [#allocation5 + $0x1], 1 }

</bundles_post_ra>
